<compile_context>
chip_gen: v6e
topology: v6e:2x2x1
jax: 0.10.0
libtpu: 0.0.40
codegen_flags: <defaults>
</compile_context>

<pallas_src>
import functools

import jax
import jax.numpy as jnp
from jax import lax
from jax.experimental import pallas as pl
from jax.experimental.pallas import tpu as pltpu


def _vmem_limit(resident_bytes):
    """Scoped-VMEM request: headroom over the resident set, clamped so it fits
    every generation (v7x physical VMEM is 64 MiB per TensorCore)."""
    return int(min(max(4 * resident_bytes, 8 * 1024 * 1024), 48 * 1024 * 1024))


# ---------------------------------------------------------------------------
# Kernel 1: hoisted input projection for both directions of one layer.
#   (rows, D) bf16 @ (D, 8H) bf16 + b  ->  (rows, 8H) f32 precomputed gates.
# ---------------------------------------------------------------------------
def _input_proj_kernel(x_ref, w_ref, b_ref, o_ref):
    o_ref[...] = (jnp.dot(x_ref[...], w_ref[...],
                          preferred_element_type=jnp.float32)
                  + b_ref[...])


def input_projection(x_tbd_bf16, w_cat_bf16, b_cat):
    """x (T,B,D) bf16; w_cat (D,8H) bf16; b_cat (8H,) f32 -> (T,B,8H) f32."""
    T, B, D = x_tbd_bf16.shape
    G = w_cat_bf16.shape[1]                                   # 8H
    M = T * B
    x2d = x_tbd_bf16.reshape(M, D)

    # Row tiling: biggest nice tile that divides M (double-buffered DMA overlap
    # + megacore sharding at production sizes); whole-array fallback at toy M.
    tile_m = M
    for cand in (1024, 512, 256, 128):
        if M % cand == 0:
            tile_m = cand
            break
    grid = (M // tile_m,)

    resident = (tile_m * D * 2 + D * G * 2 + G * 4 + tile_m * G * 4) * 2
    out = pl.pallas_call(
        _input_proj_kernel,
        out_shape=jax.ShapeDtypeStruct((M, G), jnp.float32),
        grid_spec=pltpu.PrefetchScalarGridSpec(
            num_scalar_prefetch=0,
            grid=grid,
            in_specs=[pl.BlockSpec((tile_m, D), lambda i: (i, 0)),
                      pl.BlockSpec((D, G), lambda i: (0, 0)),   # weights resident
                      pl.BlockSpec((1, G), lambda i: (0, 0))],  # bias resident
            out_specs=pl.BlockSpec((tile_m, G), lambda i: (i, 0)),
        ),
        compiler_params=pltpu.CompilerParams(
            dimension_semantics=("parallel",),
            vmem_limit_bytes=_vmem_limit(resident)),
    )(x2d, w_cat_bf16, b_cat.reshape(1, G))
    return out.reshape(T, B, G)


# ---------------------------------------------------------------------------
# Kernel 2: fused bidirectional LSTM recurrence over a VMEM-resident slab.
# ---------------------------------------------------------------------------
def _bilstm_layer_kernel(H, T, g_ref, m_ref, whhf_ref, whhb_ref, out_ref):
    """Both directions of one LSTM layer in one in-kernel time loop.

    g_ref   : (T, B, 8H) f32  precomputed input gates; [..., :4H] fwd, [..., 4H:] bwd
    m_ref   : (T, B, 1)  f32  validity mask (1.0 where t < length[b])
    whh*    : (H, 4H)    bf16 recurrent weights, pre-transposed
    out_ref : (T, B, 2H) bf16 combined hidden output; fwd -> [:H], bwd -> [H:]
    """
    B = g_ref.shape[1]
    whh_f = whhf_ref[...]          # loaded once, stay resident
    whh_b = whhb_ref[...]

    def cell(g_in, m_bool, h, c, whh):
        # Irreducible per-step recurrent matmul (bf16 operands, f32 acc).
        gates = g_in + jnp.dot(h.astype(jnp.bfloat16), whh,
                               preferred_element_type=jnp.float32)
        # Gate-sliced activations: sigmoid only where needed (i, f, o), tanh
        # only on g -- ~half the EUP pushes of full-tile sigmoid+tanh.
        if_g = jax.nn.sigmoid(gates[:, 0:2 * H])
        i_g = if_g[:, 0:H]
        f_g = if_g[:, H:2 * H]
        g_g = jnp.tanh(gates[:, 2 * H:3 * H])
        o_g = jax.nn.sigmoid(gates[:, 3 * H:4 * H])
        c_new = f_g * c + i_g * g_g
        h_new = o_g * jnp.tanh(c_new)
        # packed-sequence semantics via selects: only valid steps update state,
        # padded positions emit zeros (pad_packed_sequence zero-fill).
        h_keep = jnp.where(m_bool, h_new, h)
        c_keep = jnp.where(m_bool, c_new, c)
        out = jnp.where(m_bool, h_new, 0.0)
        return h_keep, c_keep, out

    def step(t, carry):
        hf, cf, hb, cb = carry

        # forward direction at time t
        g_t = g_ref[t]                                   # (B, 8H)
        m_t = m_ref[t] > 0.0                             # (B, 1) bool
        hf, cf, of = cell(g_t[:, :4 * H], m_t, hf, cf, whh_f)
        out_ref[t, :, 0:H] = of.astype(out_ref.dtype)

        # backward direction at time T-1-t (independent chain; interleaves with
        # the forward one in the VLIW schedule)
        tb = T - 1 - t
        g_b = g_ref[tb]
        m_b = m_ref[tb] > 0.0
        hb, cb, ob = cell(g_b[:, 4 * H:], m_b, hb, cb, whh_b)
        out_ref[tb, :, H:2 * H] = ob.astype(out_ref.dtype)

        return hf, cf, hb, cb

    zeros = jnp.zeros((B, H), jnp.float32)
    unroll = T if T <= 16 else 4   # partial unroll so chains interleave across iters
    lax.fori_loop(0, T, step, (zeros, zeros, zeros, zeros), unroll=unroll)


def bilstm_layer(x_tbd_bf16, mask_tb1, lp):
    """One bidirectional LSTM layer: (T,B,D) bf16 -> (T,B,2H) bf16."""
    T, B, D = x_tbd_bf16.shape
    H = lp['w_hh_f_t'].shape[0]

    # TODO(synk): for production VMEM pressure (v7x, 64 MiB) the gate slab can
    # also be emitted in bf16; kept f32 here for closer numerical parity.
    gates_in = input_projection(x_tbd_bf16, lp['w_ih_cat'], lp['b_cat'])   # (T,B,8H) f32

    kernel = functools.partial(_bilstm_layer_kernel, H, T)
    resident = (T * B * 8 * H * 4           # gates slab (f32)
                + T * B * 4                 # mask
                + 2 * H * 4 * H * 2         # recurrent weights (bf16)
                + T * B * 2 * H * 2)        # output slab (bf16)
    # No grid: the recurrence forbids pipelining over time anyway, so the whole
    # slab lives in VMEM and the loop runs in-kernel (weights loaded once).
    out = pl.pallas_call(
        kernel,
        out_shape=jax.ShapeDtypeStruct((T, B, 2 * H), jnp.bfloat16),
        compiler_params=pltpu.CompilerParams(
            vmem_limit_bytes=_vmem_limit(resident)),
    )(gates_in, mask_tb1,
      lp['w_hh_f_t'], lp['w_hh_b_t'])
    return out                                                            # (T, B, 2H) bf16


# ---------------------------------------------------------------------------
# One-time weight preparation (hoisted out of the forward: no per-call
# transpose/concat/cast passes over the weight matrices).
# ---------------------------------------------------------------------------
def prepare_params(params):
    prepared = {'embeddings': params['embeddings'],
                'ff_w_t': params['ff_w'].T.astype(jnp.float32),
                'ff_b': params['ff_b'].astype(jnp.float32),
                'lstm': []}
    for p in params['lstm']:
        prepared['lstm'].append({
            # (D, 8H): fwd 4H columns | bwd 4H columns, bf16 MXU operand
            'w_ih_cat': jnp.concatenate([p['w_ih_f'].T, p['w_ih_b'].T],
                                        axis=1).astype(jnp.bfloat16),
            # folded biases (8H,), kept f32
            'b_cat': jnp.concatenate([p['b_ih_f'] + p['b_hh_f'],
                                      p['b_ih_b'] + p['b_hh_b']]).astype(jnp.float32),
            'w_hh_f_t': p['w_hh_f'].T.astype(jnp.bfloat16),   # (H, 4H)
            'w_hh_b_t': p['w_hh_b'].T.astype(jnp.bfloat16),   # (H, 4H)
        })
    return prepared


# ---------------------------------------------------------------------------
# Full network forward (embedding lookup / last-step gather / 2-wide head are
# XLA glue: a Pallas call for a (B,2H)@(2H,2) would be pure overhead).
# ---------------------------------------------------------------------------
def bilstm_network_forward(prepared, inputs, input_lens):
    """Equivalent of BiLSTMNetwork.forward(inputs, input_lens) -> logits."""
    emb = prepared['embeddings'][inputs]                      # (B, T, E) lookup (glue)
    B, T, _ = emb.shape
    x = jnp.transpose(emb, (1, 0, 2)).astype(jnp.bfloat16)    # (T, B, E) time-major, bf16 feed

    t_idx = jnp.arange(T, dtype=jnp.int32)
    mask = (t_idx[:, None] < input_lens[None, :]).astype(jnp.float32)[:, :, None]  # (T,B,1)

    layer_in = x
    for lp in prepared['lstm']:
        layer_in = bilstm_layer(layer_in, mask, lp)
        # TODO(synk): nn.LSTM inter-layer dropout (p=0.1) is train-only; eval = identity.

    lstm_out = layer_in                                       # (T, B, 2H) bf16
    # gather output at the last valid timestep of each sequence (lens - 1);
    # input_lens must be >= 1 (zero-length sequences are undefined, as in the
    # PyTorch reference which would also index position -1).
    ff_in = lstm_out[input_lens - 1, jnp.arange(B), :].astype(jnp.float32)   # (B, 2H)
    logits = ff_in @ prepared['ff_w_t'] + prepared['ff_b']                   # (B, 2)
    return logits


if __name__ == "__main__":
    key = jax.random.PRNGKey(0)
    vocab, E, H = 20, 16, 32          # vocab size, embedding dim, lstm_dim
    B, T = 2, 8

    ks = jax.random.split(key, 16)

    def xavier(k, shape):
        fan_out, fan_in = shape
        std = (2.0 / (fan_in + fan_out)) ** 0.5
        return std * jax.random.normal(k, shape, jnp.float32)

    emb_table = jax.random.normal(ks[0], (vocab, E), jnp.float32)
    emb_table = emb_table.at[0].set(0.0)   # padding_idx=0 row kept zero

    lstm_params = []
    ki = 1
    for layer in range(2):
        D_in = E if layer == 0 else 2 * H
        p = {}
        for d in ('f', 'b'):
            p[f'w_ih_{d}'] = xavier(ks[ki], (4 * H, D_in)); ki += 1
            p[f'w_hh_{d}'] = xavier(ks[ki], (4 * H, H)); ki += 1
            p[f'b_ih_{d}'] = jnp.zeros((4 * H,), jnp.float32)
            p[f'b_hh_{d}'] = jnp.zeros((4 * H,), jnp.float32)
        lstm_params.append(p)

    ff_w = xavier(ks[ki], (2, 2 * H)); ki += 1
    ff_b = jnp.zeros((2,), jnp.float32)

    params = {'embeddings': emb_table, 'lstm': lstm_params,
              'ff_w': ff_w, 'ff_b': ff_b}
    prepared = prepare_params(params)    # one-time weight prep (outside forward)

    inputs = jax.random.randint(ks[ki], (B, T), 1, vocab, dtype=jnp.int32); ki += 1
    input_lens = jnp.array([T, 5], dtype=jnp.int32)   # lengths <= T, >= 1

    logits = bilstm_network_forward(prepared, inputs, input_lens)
    jax.block_until_ready(logits)
    assert logits.shape == (B, 2) and logits.dtype == jnp.float32
    print("KERNEL_OK")
</pallas_src>

<mosaic_0001>
module attributes {stable_mosaic.version = 11 : i64} {
  func.func @_input_proj_kernel(%arg0: i32, %arg1: memref<16x16xbf16, #tpu.memory_space<vmem>>, %arg2: memref<16x256xbf16, #tpu.memory_space<vmem>>, %arg3: memref<1x256xf32, #tpu.memory_space<vmem>>, %arg4: memref<16x256xf32, #tpu.memory_space<vmem>>) attributes {dimension_semantics = [#tpu.dimension_semantics<parallel>], iteration_bounds = array<i64: 1>, scalar_prefetch = 0 : i64, scratch_operands = 0 : i64, tpu.core_type = #tpu.core_type<tc>, window_params = [{transform_indices = @transform_0, window_bounds = array<i64: 16, 16>}, {pipeline_mode = #tpu.pipeline_mode<synchronous>, transform_indices = @transform_1, window_bounds = array<i64: 16, 256>}, {pipeline_mode = #tpu.pipeline_mode<synchronous>, transform_indices = @transform_2, window_bounds = array<i64: 1, 256>}, {transform_indices = @transform_3, window_bounds = array<i64: 16, 256>}]} {
    %c0 = arith.constant 0 : index
    %c0_0 = arith.constant 0 : index
    %0 = vector.load %arg1[%c0, %c0_0] : memref<16x16xbf16, #tpu.memory_space<vmem>>, vector<16x16xbf16>
    %c0_1 = arith.constant 0 : index
    %c0_2 = arith.constant 0 : index
    %1 = vector.load %arg2[%c0_1, %c0_2] : memref<16x256xbf16, #tpu.memory_space<vmem>>, vector<16x256xbf16>
    %cst = arith.constant dense<0.000000e+00> : vector<16x256xf32>
    %2 = tpu.matmul %0, %1, %cst {dimension_numbers = #tpu.dot_dimension_numbers<[1], [0], [0], [1], [0, 0, 1, 1], [], []>} : vector<16x16xbf16>, vector<16x256xbf16>, vector<16x256xf32> -> vector<16x256xf32>
    %c0_3 = arith.constant 0 : index
    %c0_4 = arith.constant 0 : index
    %3 = vector.load %arg3[%c0_3, %c0_4] : memref<1x256xf32, #tpu.memory_space<vmem>>, vector<1x256xf32>
    %4 = vector.broadcast %3 : vector<1x256xf32> to vector<16x256xf32>
    %5 = arith.addf %2, %4 : vector<16x256xf32>
    %c0_5 = arith.constant 0 : index
    %c0_6 = arith.constant 0 : index
    %6 = vector.load %arg4[%c0_5, %c0_6] : memref<16x256xf32, #tpu.memory_space<vmem>>, vector<16x256xf32>
    tpu.vector_store %arg4[%c0_5, %c0_6], %5 {strides = array<i32>} : memref<16x256xf32, #tpu.memory_space<vmem>>, vector<16x256xf32>,
    return
  }
  func.func @transform_0(%arg0: i32) -> (i32, i32) {
    %c0_i32 = arith.constant 0 : i32
    %c0_i32_0 = arith.constant 0 : i32
    return %arg0, %c0_i32 : i32, i32
  }
  func.func @transform_1(%arg0: i32) -> (i32, i32) {
    %c0_i32 = arith.constant 0 : i32
    %c0_i32_0 = arith.constant 0 : i32
    %c0_i32_1 = arith.constant 0 : i32
    return %c0_i32, %c0_i32_0 : i32, i32
  }
  func.func @transform_2(%arg0: i32) -> (i32, i32) {
    %c0_i32 = arith.constant 0 : i32
    %c0_i32_0 = arith.constant 0 : i32
    %c0_i32_1 = arith.constant 0 : i32
    return %c0_i32, %c0_i32_0 : i32, i32
  }
  func.func @transform_3(%arg0: i32) -> (i32, i32) {
    %c0_i32 = arith.constant 0 : i32
    %c0_i32_0 = arith.constant 0 : i32
    return %arg0, %c0_i32 : i32, i32
  }
}

</mosaic_0001>

<bundles_post_ra>
// kernel: tpu_custom_call.1
= control target key start
LH: loop header
LB: loop body
LE: loop exit
PB: predicated region body
PF: predicated region fallthrough
CT: control target
= control target key end

     0   :  { %8 = vsyncpa [#allocation3], 0  ;;  %s270_s0 = inlined_call_operand.hbm [shape: bf16[16,16], index: 0, kind: input, shape index: {}]   ;;  %s271_s1 = inlined_call_operand.hbm [shape: bf16[16,256], index: 1, kind: input, shape index: {}]   ;;  %s272_s2 = inlined_call_operand.vmem [shape: f32[1,256], index: 2, kind: input, shape index: {}]   ;;  %s273_s3 = inlined_call_operand.hbm [shape: f32[16,256], index: 3, kind: output, shape index: {}]  }
   0x1   :  { %9 = vsyncpa [#allocation6], 0 }
   0x2   :  { %10 = vsyncpa [#allocation4], 0  ;;  %s228_s12 = smov [#allocation2]  }
   0x3   :  { %s16_s13 = sshll.u32 %s228_s12, 4  ;;  %s17_s13 = int_to_ptr.vmem [resolvable:$true] %s16_s13 }
   0x4   :  { %s170_s14 = scalar_lea.vmem %s17_s13, 128  ;;  %p175_p1 = scmp.lt.s32.totalorder %s17_s13, %s17_s13 }
   0x5   :  { %p171_p0 = scmp.ne.s32.totalorder %s17_s13, %s170_s14  ;;  %p176_p2 = scmp.lt.s32.totalorder %s170_s14, %s170_s14 }
   0x7   :  { %p177_p3 = por %p176_p2, %p175_p1 }
   0x9   :  { %p178_p4 = pnand %p177_p3, %p171_p0 }
   0xb   :  { %181 = shalt.err (!%p178_p4)
}
   0xc   :  { %s229_s15 = smov 64   ;;  %s230_s16 = smov 4  }
   0xd   :  { %22 = dma.hbm_to_vmem [thread:$0]  %s270_s0, 128, %s17_s13, [#allocation3], %s229_s15, %s229_s15, %s230_s16  }
   0xe   :  { %s231_s19 = smov [#allocation5]  }
   0xf   :  { %s28_s20 = sshll.u32 %s231_s19, 4  ;;  %s29_s20 = int_to_ptr.vmem [resolvable:$true] %s28_s20 }
  0x10   :  { %s190_s21 = scalar_lea.vmem %s29_s20, 256  ;;  %p195_p6 = scmp.lt.s32.totalorder %s29_s20, %s29_s20 }
  0x11   :  { %p191_p5 = scmp.ne.s32.totalorder %s29_s20, %s190_s21  ;;  %p196_p7 = scmp.lt.s32.totalorder %s190_s21, %s190_s21 }
  0x13   :  { %p197_p8 = por %p196_p7, %p195_p6 }
  0x15   :  { %p198_p9 = pnand %p197_p8, %p191_p5 }
  0x17   :  { %201 = shalt.err (!%p198_p9)
}
  0x18   :  { %s232_s22 = smov 128   ;;  %s233_s23 = smov 8  }
  0x19   :  { %34 = dma.hbm_to_vmem [thread:$0]  %s271_s1, 256, %s29_s20, [#allocation6], %s232_s22, %s232_s22, %s233_s23  }
  0x1a   :  { %222 = dma.done.wait [#allocation3], 128  }
  0x1b   :  { %223 = vsyncadd [#allocation3], 4294967168 }
  0x1c   :  { %224 = dma.done.wait [#allocation6], 256  }
  0x1d   :  { %225 = vsyncadd [#allocation6], 4294967040  ;;  %v234_v0 = vmov 0   ;;  %v158_v1 = vld [vmem:[#allocation5 + $0x4] ss:$8 sps:$4 sm:$0xff]   ;;  %v161_v3 = vld [vmem:[#allocation2] sm:$0xff]   ;;  %v50_v4 = vlaneseq }
  0x1e   :  { %111 = vmatprep.mubr.bf16.mxu0 %v234_v0  ;;  %v160_v2 = vld [vmem:[#allocation5] ss:$8 sps:$4 sm:$0xff]   ;;  %93 = vmatprep.subr.bf16.mxu0 %v158_v1  ;;  %vm75_vm0 = vcmask 130048   ;;  %v48_v7 = vld [vmem:[%s272_s2] sm:$0x3]  ;;  %s235_s1 = smov [#allocation7]  }
  0x1f   :  { %94 = vmatpush1.bf16.msra.mxu0 %v160_v2  ;;  %v51_v5 = vshrl.u32 %v50_v4, 7  ;;  %s131_s27 = sshll.u32 %s235_s1, 4  ;;  %s132_s27 = int_to_ptr.vmem [resolvable:$true] %s131_s27 }
  0x20   :  { %s202_s28 = scalar_lea.vmem %s132_s27, 512  ;;  %p207_p11 = scmp.lt.s32.totalorder %s132_s27, %s132_s27 }
  0x21   :  { %v52_v6 = vsub.s32 0, %v51_v5  ;;  %v56_v8 = vsub.s32 1, %v51_v5  ;;  %p203_p10 = scmp.ne.s32.totalorder %s132_s27, %s202_s28  ;;  %p208_p12 = scmp.lt.s32.totalorder %s202_s28, %s202_s28 }
  0x22   :  { %147 = vmatmul.mubr.msk.bf16.vlgmr.msra.gmra.mxu0 %vm75_vm0, %v161_v3 }
  0x23   :  { %v53_v9 = vrot.slane %v48_v7, %v52_v6  ;;  %v57_v10 = vrot.slane %v48_v7, %v56_v8  ;;  %p209_p13 = por %p208_p12, %p207_p11 }
  0x25   :  { %p210_p0 = pnand %p209_p13, %p203_p10 }
  0xe2   :  { %v113_v11 = vpop.f32.mrf.mxu0 }
  0xe3   :  { %v114_v12 = vadd.f32 %v113_v11, %v53_v9 }
  0xe4   :  { %v115_v13 = vpop.f32.mrf.mxu0 }
  0xe5   :  { %122 = vst [vmem:[#allocation7] sm:$0xff] %v114_v12  ;;  %v116_v14 = vadd.f32 %v115_v13, %v57_v10 }
  0xe6   :  { %v117_v15 = vpop.f32.mrf.mxu0 }
  0xe7   :  { %123 = vst [vmem:[#allocation7 + $0x8] sm:$0xff] %v116_v14  ;;  %v118_v16 = vadd.f32 %v117_v15, %v53_v9 }
  0xe8   :  { %v119_v17 = vpop.f32.mrf.mxu0 }
  0xe9   :  { %124 = vst [vmem:[#allocation7 + $0x10] sm:$0xff] %v118_v16  ;;  %v120_v18 = vadd.f32 %v119_v17, %v57_v10 }
  0xeb   :  { %125 = vst [vmem:[#allocation7 + $0x18] sm:$0xff] %v120_v18 }
  0xec   :  { %213 = shalt.err (!%p210_p0)
}
  0xed   :  { %s236_s2 = smov 256   ;;  %s237_s29 = smov 16  }
  0xee   :  { %137 = dma.vmem_to_hbm [thread:$0]  %s132_s27, 512, %s273_s3, [#allocation4], %s236_s2, %s236_s2, %s237_s29  }
  0xef   :  { %226 = dma.done.wait [#allocation4], 512  }
  0xf0   :  { %227 = vsyncadd [#allocation4], 4294966784 }
  0xf1   :  { %141 = vsyncpa [#allocation3], 1 }
  0xf2   :  { %142 = vsyncpa [#allocation6], 1 }
  0xf3   :  { %143 = vsyncpa [#allocation4], 1 }

</bundles_post_ra>
